<compile_context>
chip_gen: v7x
topology: tpu7x:2x2x1
jax: 0.10.0
libtpu: 0.0.40
codegen_flags: <defaults>
</compile_context>

<pallas_src>
import jax
import jax.numpy as jnp
from jax.experimental import pallas as pl
from jax.experimental.pallas import tpu as pltpu


def _class_gather_kernel(cls_ref, x_hbm, out_ref, sem):
    """out[i*TILE_N + r, :] = x[i*TILE_N + r, classes[i*TILE_N + r], :].

    cls_ref : SMEM int32[N]       scalar-prefetched class ids
    x_hbm   : HBM  [N, C, E]      raw ref (memory_space=pl.ANY, no auto-DMA)
    out_ref : VMEM [TILE_N, E]    auto-pipelined output block (DMA landing zone)
    sem     : DMA semaphore [1]   shared by every row copy of this tile
    """
    i = pl.program_id(0)
    tile_n, _ = out_ref.shape
    n_total, n_classes, _ = x_hbm.shape
    base = i * tile_n
    # Rows that actually exist in this (possibly ragged last) tile.
    valid = jnp.minimum(tile_n, n_total - base)

    @pl.loop(0, valid)
    def _start(r):
        n = base + r
        # NOTE: torch fancy indexing would raise on an out-of-range class id;
        # here it is clamped (inference-only, documented behaviour).
        c = jnp.clip(cls_ref[n], 0, n_classes - 1)
        pltpu.make_async_copy(
            x_hbm.at[n, pl.ds(c, 1), :],   # (1, E) selected class row in HBM
            out_ref.at[pl.ds(r, 1), :],    # lands directly in the output block
            sem.at[0],
        ).start()

    @pl.loop(0, valid)
    def _wait(_):
        # Every copy is (1, E): wait with a same-sized descriptor on the shared
        # semaphore -- no n/c recompute or SMEM loads in the drain phase.
        pltpu.make_async_copy(
            x_hbm.at[0, pl.ds(0, 1), :],
            out_ref.at[pl.ds(0, 1), :],
            sem.at[0],
        ).wait()
    # Rows >= `valid` of the last tile are never written; Pallas clips the
    # ragged output block on writeback, so they are discarded, not stored.


def _round_up(a, b):
    return ((a + b - 1) // b) * b


def class_gather(x, classes, *, tile_n=256, interpret=False):
    """Pallas DMA-gather: x (N, C, E), classes (N,) int  ->  (N, E)."""
    N, C, E = x.shape
    if E % 128 != 0:
        raise ValueError("embed_dim must be a multiple of 128 (pad it in layers())")

    itemsize = jnp.dtype(x.dtype).itemsize
    min_rows = 8 * max(1, 4 // itemsize)   # sublane granularity: 8 f32 / 16 bf16 / 32 int8
    # Size the tile so that:
    #   * there are >=2 grid tiles whenever N allows it (v7x dual-TC sharding),
    #   * tiles are big (default 256 rows) to amortize per-step + per-DMA cost,
    #   * the output block stays <= ~4 MiB (x2 double-buffered) of VMEM.
    max_rows_vmem = max(min_rows,
                        ((4 << 20) // (E * itemsize)) // min_rows * min_rows)
    half_n = _round_up(pl.cdiv(N, 2), min_rows)
    tile_n = _round_up(max(min_rows, min(tile_n, half_n, max_rows_vmem)), min_rows)
    n_tiles = pl.cdiv(N, tile_n)

    grid_spec = pltpu.PrefetchScalarGridSpec(
        num_scalar_prefetch=1,                            # classes -> SMEM
        grid=(n_tiles,),
        in_specs=[pl.BlockSpec(memory_space=pl.ANY)],     # x stays in HBM
        out_specs=pl.BlockSpec((tile_n, E), lambda i, cls_ref: (i, 0)),
        scratch_shapes=[pltpu.SemaphoreType.DMA((1,))],   # one shared DMA sem
    )
    return pl.pallas_call(
        _class_gather_kernel,
        out_shape=jax.ShapeDtypeStruct((N, E), x.dtype),  # no padding, no post-slice
        grid_spec=grid_spec,
        compiler_params=pltpu.CompilerParams(
            dimension_semantics=("parallel",),            # shard tiles across TCs (v7x)
        ),
        interpret=interpret,
    )(classes.astype(jnp.int32), x)


class BaseEmbedHeadPallas:
    """JAX/Pallas port of BaseEmbedHead (inference semantics)."""

    def __init__(self, tracker=None, vis_period=0):
        # TODO(synk): `tracker` is an external stateful module (build_tracker);
        # it has no Pallas equivalent and is not translated.
        self.tracker = tracker
        self.vis_period = vis_period

    def layers(self, x):
        # TODO(synk): layers() raises NotImplementedError in the base class;
        # treated as identity (x is assumed to already be the (N, C, E) output).
        return x

    def forward(self, x, instance_lens, classes, *, tile_n=256):
        """
        x:             (N, C, E) region embeddings (output of `layers`)
        instance_lens: python list of per-image instance counts (sum == N);
                       must be static under jit.
        classes:       (N,) int predicted classes (pred_classes at inference)
        Returns a list of per-image embedding arrays (the `pred_embeds` fields).
        """
        x = self.layers(x)
        assert sum(instance_lens) == x.shape[0], \
            "instance_lens must be static and sum to N"
        cls_agnostic_embed = x.shape[1] == 1
        if cls_agnostic_embed:
            x = x[:, 0, :]                               # squeeze(1) — trivial glue
        else:
            x = class_gather(x, classes, tile_n=tile_n)  # Pallas DMA-gather kernel
        # TODO(synk): the per-image split below is wrapper glue (each slice is
        # another small HBM copy under jit); consumers wanting one array should
        # use `x` directly instead of re-concatenating the pieces.
        embeds, start = [], 0
        for n in instance_lens:
            embeds.append(x[start:start + n])
            start += n
        # TODO(synk): losses() is abstract and self.tracker(instances) is external;
        # returning per-image pred_embeds instead.
        return embeds


if __name__ == "__main__":
    key = jax.random.PRNGKey(0)
    k_x, k_c, k_x2, k_c2, k_x3, k_c3 = jax.random.split(key, 6)

    head = BaseEmbedHeadPallas(tracker=None, vis_period=0)

    # --- case 1: class-specific embeddings, even tiles -------------------------
    N, C, E = 16, 4, 128
    instance_lens = [9, 7]
    x = jax.random.normal(k_x, (N, C, E), dtype=jnp.float32)
    classes = jax.random.randint(k_c, (N,), 0, C, dtype=jnp.int32)

    embeds = head.forward(x, instance_lens, classes)     # auto tile_n -> 2 tiles
    embeds = [jax.block_until_ready(e) for e in embeds]
    got = jnp.concatenate(embeds, axis=0)
    ref = x[jnp.arange(N), classes]
    assert got.shape == (N, E)
    assert [e.shape[0] for e in embeds] == instance_lens
    assert jnp.allclose(got, ref, atol=1e-6), "case 1: mismatch vs reference gather"

    # --- case 2: ragged N (clipped last block) ----------------------------------
    N2 = 13
    lens2 = [6, 7]
    x2 = jax.random.normal(k_x2, (N2, C, E), dtype=jnp.float32)
    classes2 = jax.random.randint(k_c2, (N2,), 0, C, dtype=jnp.int32)
    e2 = head.forward(x2, lens2, classes2)
    e2 = [jax.block_until_ready(e) for e in e2]
    got2 = jnp.concatenate(e2, axis=0)
    assert got2.shape == (N2, E)
    assert jnp.allclose(got2, x2[jnp.arange(N2), classes2], atol=1e-6), \
        "case 2: mismatch vs reference gather"

    # --- case 3: several tiles + short ragged tail (explicit tile_n) ------------
    N3 = 50
    lens3 = [20, 30]
    x3 = jax.random.normal(k_x3, (N3, C, E), dtype=jnp.float32)
    classes3 = jax.random.randint(k_c3, (N3,), 0, C, dtype=jnp.int32)
    e3 = head.forward(x3, lens3, classes3, tile_n=16)    # 4 tiles, last has 2 rows
    e3 = [jax.block_until_ready(e) for e in e3]
    got3 = jnp.concatenate(e3, axis=0)
    assert jnp.allclose(got3, x3[jnp.arange(N3), classes3], atol=1e-6), \
        "case 3: mismatch vs reference gather"

    # --- case 4: class-agnostic path (C == 1) ------------------------------------
    x1 = jax.random.normal(k_x, (N, 1, E), dtype=jnp.float32)
    e1 = head.forward(x1, instance_lens, classes)
    e1 = [jax.block_until_ready(e) for e in e1]
    assert jnp.allclose(jnp.concatenate(e1, axis=0), x1[:, 0, :])

    print("KERNEL_OK")
</pallas_src>

<mosaic_0001>
module attributes {stable_mosaic.version = 11 : i64} {
  func.func @_class_gather_kernel(%arg0: i32, %arg1: memref<16xi32, #tpu.memory_space<smem>>, %arg2: memref<16x4x128xf32, #tpu.memory_space<any>>, %arg3: memref<8x128xf32, #tpu.memory_space<vmem>>, %arg4: memref<1x!tpu.dma_semaphore, #tpu.memory_space<semaphore_mem>>) attributes {dimension_semantics = [#tpu.dimension_semantics<parallel>], iteration_bounds = array<i64: 2>, scalar_prefetch = 1 : i64, scratch_operands = 1 : i64, tpu.core_type = #tpu.core_type<tc>, window_params = [{}, {transform_indices = @transform_1, window_bounds = array<i64: 8, 128>}]} {
    %c8_i32 = arith.constant 8 : i32
    %0 = arith.muli %arg0, %c8_i32 : i32
    %c16_i32 = arith.constant 16 : i32
    %1 = arith.subi %c16_i32, %0 : i32
    %c8_i32_0 = arith.constant 8 : i32
    %2 = arith.minsi %c8_i32_0, %1 : i32
    %c0_i32 = arith.constant 0 : i32
    %3 = arith.subi %2, %c0_i32 : i32
    %c1_i32 = arith.constant 1 : i32
    %c1_i32_1 = arith.constant 1 : i32
    %4 = arith.subi %c1_i32, %c1_i32_1 : i32
    %5 = arith.addi %3, %4 : i32
    %c1_i32_2 = arith.constant 1 : i32
    %6 = arith.divsi %5, %c1_i32_2 : i32
    %c1_i32_3 = arith.constant 1 : i32
    %c0_i32_4 = arith.constant 0 : i32
    %c0_i32_5 = arith.constant 0 : i32
    %7 = arith.subi %6, %c0_i32_5 : i32
    %8 = arith.addi %c0_i32_5, %7 : i32
    %c1_i32_6 = arith.constant 1 : i32
    scf.for %arg5 = %c0_i32_5 to %8 step %c1_i32_6  : i32 {
      %15 = arith.muli %arg5, %c1_i32_3 : i32
      %16 = arith.addi %c0_i32_4, %15 : i32
      %17 = arith.addi %0, %16 : i32
      %18 = arith.index_cast %17 : i32 to index
      %19 = memref.load %arg1[%18] : memref<16xi32, #tpu.memory_space<smem>>
      %c0_i32_15 = arith.constant 0 : i32
      %c3_i32 = arith.constant 3 : i32
      %20 = arith.maxsi %c0_i32_15, %19 : i32
      %21 = arith.minsi %c3_i32, %20 : i32
      %c0_i32_16 = arith.constant 0 : i32
      %c0_i32_17 = arith.constant 0 : i32
      %22 = tpu.memref_slice %arg2[%17, %21, %c0_i32_17] : memref<16x4x128xf32, #tpu.memory_space<any>> -> memref<1x1x128xf32, #tpu.memory_space<any>>
      %23 = tpu.memref_squeeze %22 : memref<1x1x128xf32, #tpu.memory_space<any>> -> memref<1x128xf32, #tpu.memory_space<any>>
      %c0_i32_18 = arith.constant 0 : i32
      %24 = tpu.memref_slice %arg3[%16, %c0_i32_18] : memref<8x128xf32, #tpu.memory_space<vmem>> -> memref<1x128xf32, #tpu.memory_space<vmem>>
      %25 = tpu.memref_slice %arg4[%c0_i32_16] : memref<1x!tpu.dma_semaphore, #tpu.memory_space<semaphore_mem>> -> memref<1x!tpu.dma_semaphore, #tpu.memory_space<semaphore_mem>>
      %26 = tpu.memref_squeeze %25 : memref<1x!tpu.dma_semaphore, #tpu.memory_space<semaphore_mem>> -> memref<!tpu.dma_semaphore, #tpu.memory_space<semaphore_mem>>
      tpu.enqueue_dma source(%23 : memref<1x128xf32, #tpu.memory_space<any>>) target(%24 : memref<1x128xf32, #tpu.memory_space<vmem>>) target_semaphore(%26 : memref<!tpu.dma_semaphore, #tpu.memory_space<semaphore_mem>>)
    }
    %c0_i32_7 = arith.constant 0 : i32
    %9 = arith.subi %2, %c0_i32_7 : i32
    %c1_i32_8 = arith.constant 1 : i32
    %c1_i32_9 = arith.constant 1 : i32
    %10 = arith.subi %c1_i32_8, %c1_i32_9 : i32
    %11 = arith.addi %9, %10 : i32
    %c1_i32_10 = arith.constant 1 : i32
    %12 = arith.divsi %11, %c1_i32_10 : i32
    %c1_i32_11 = arith.constant 1 : i32
    %c0_i32_12 = arith.constant 0 : i32
    %c0_i32_13 = arith.constant 0 : i32
    %13 = arith.subi %12, %c0_i32_13 : i32
    %14 = arith.addi %c0_i32_13, %13 : i32
    %c1_i32_14 = arith.constant 1 : i32
    scf.for %arg5 = %c0_i32_13 to %14 step %c1_i32_14  : i32 {
      %15 = arith.muli %arg5, %c1_i32_11 : i32
      %16 = arith.addi %c0_i32_12, %15 : i32
      %c0_i32_15 = arith.constant 0 : i32
      %c0_i32_16 = arith.constant 0 : i32
      %c0_i32_17 = arith.constant 0 : i32
      %c0_i32_18 = arith.constant 0 : i32
      %17 = tpu.memref_slice %arg2[%c0_i32_15, %c0_i32_17, %c0_i32_18] : memref<16x4x128xf32, #tpu.memory_space<any>> -> memref<1x1x128xf32, #tpu.memory_space<any>>
      %18 = tpu.memref_squeeze %17 : memref<1x1x128xf32, #tpu.memory_space<any>> -> memref<1x128xf32, #tpu.memory_space<any>>
      %c0_i32_19 = arith.constant 0 : i32
      %c0_i32_20 = arith.constant 0 : i32
      %19 = tpu.memref_slice %arg3[%c0_i32_19, %c0_i32_20] : memref<8x128xf32, #tpu.memory_space<vmem>> -> memref<1x128xf32, #tpu.memory_space<vmem>>
      %20 = tpu.memref_slice %arg4[%c0_i32_16] : memref<1x!tpu.dma_semaphore, #tpu.memory_space<semaphore_mem>> -> memref<1x!tpu.dma_semaphore, #tpu.memory_space<semaphore_mem>>
      %21 = tpu.memref_squeeze %20 : memref<1x!tpu.dma_semaphore, #tpu.memory_space<semaphore_mem>> -> memref<!tpu.dma_semaphore, #tpu.memory_space<semaphore_mem>>
      tpu.wait_dma2 semaphore(%21 : memref<!tpu.dma_semaphore, #tpu.memory_space<semaphore_mem>>) src(%18 : memref<1x128xf32, #tpu.memory_space<any>>) dst(%19 : memref<1x128xf32, #tpu.memory_space<vmem>>)
    }
    return
  }
  func.func @transform_1(%arg0: i32, %arg1: memref<16xi32, #tpu.memory_space<smem>>) -> (i32, i32) {
    %c0_i32 = arith.constant 0 : i32
    %c0_i32_0 = arith.constant 0 : i32
    return %arg0, %c0_i32 : i32, i32
  }
}

</mosaic_0001>

<bundles_post_ra>
// kernel: tpu_custom_call.1
= control target key start
LH: loop header
LB: loop body
LE: loop exit
PB: predicated region body
PF: predicated region fallthrough
CT: control target
= control target key end

     0   :  { %s511_s0 = inlined_call_operand.hbm [shape: s32[16], index: 0, kind: input, shape index: {}]   ;;  %s512_s1 = inlined_call_operand.hbm [shape: f32[16,4,128], index: 1, kind: input, shape index: {}]   ;;  %s513_s2 = inlined_call_operand.hbm [shape: f32[16,128], index: 2, kind: output, shape index: {}]  }
   0x1   :  { %s248_s11 = scalar_lea.hbm %s511_s0, 16 }
   0x2   :  { %p249_p0 = scmp.ne.s32.totalorder %s511_s0, %s248_s11  ;;  %p252_p1 = scmp.lt.u32.totalorder %s248_s11, %s511_s0 }
   0x4   :  { %p254_p2 = pnand %p252_p1, %p249_p0 }
   0x6   :  { %257 = shalt.err (!%p254_p2)  }
   0x7   :  { %s358_s16 = smov [#allocation4]  }
   0x8   :  { %8 = dma.hbm_to_smem %s511_s0, 16, %s358_s16, [#allocation3] }
   0x9   :  { %330 = dma.done.wait [#allocation3], 16 }
   0xa   :  { %331 = vsyncadd [#allocation3], 4294967280 }
   0xb   :  { %10 = sfence }
   0xc   :  { %11 = vsyncpa [#allocation6], 0 }
   0xd   :  { %13 = vsyncpa [#allocation6 + $0x1], 0  ;;  %s388_s19 = smov 0   ;;  %s390_s20 = smov 0  }
   0xe   :  { %s392_s21 = smov 0  }
   0xf LB: > { %s173_s0 = sadd.s32 4294967295, %s348_s21   ;;  %s405_s22 = sadd.s32 1, %s348_s21   ;;  %s348_s21 = sphi %s392_s21, %s522_s21   ;;  %s344_s20 = sphi %s390_s20, %s521_s20   ;;  %s340_s19 = sphi %s388_s19, %s520_s19  }
  0x10   : > { %s22_s23 = ssub.s32 %s348_s21, %s405_s22  ;;  %s25_s24 = sadd.s32 1, %s344_s20 }
  0x11   : > { %p23_p3 = scmp.eq.s32.totalorder %s22_s23, 0  ;;  %p174_p4 = scmp.ne.s32.totalorder %s22_s23, 0 }
  0x12   : > { %p29_p5 = scmp.eq.s32.totalorder %s348_s21, 1  ;;  %p34_p6 = scmp.ne.s32.totalorder %s344_s20, %s340_s19 }
  0x13   : > { %s414_s25 = scalar_select %p23_p3, %s344_s20, %s25_s24  }
  0x14   : > { %p416_p7 = por %p174_p4, %p29_p5  ;;  %p35_p8 = scmp.eq.s32.totalorder %s173_s0, 1 }
  0x15   : > { %p175_p10 = scmp.ge.s32.totalorder %s348_s21, 2 }
  0x16   : > { %p420_p9 = por %p35_p8, %p34_p6  ;;  %s49_s28 = sand.u32 (!%p175_p10), 1, %s344_s20  }
  0x17   : > { %44 = sbr.rel (%p175_p10) target bundleno = 128 (0x80), region = 12  ;;  %s514_s29 = sshll.u32 (!%p175_p10), %s348_s21, 3 }
  0x18   : > { %s429_s30 = sshll.u32 (!%p175_p10), %s49_s28, 3  ;;  %s433_s3 = ssub.s32 (!%p175_p10), 16, %s514_s29 }
  0x19   : > { %p54_p11 = scmp.lt.s32.totalorder (!%p175_p10), %s433_s3, 8  ;;  %s51_s5 = scalar_lea.vmem (!%p175_p10), [#allocation5], %s429_s30 }
  0x1a   : > { %p515_p12 = scmp.le.s32.totalorder (!%p175_p10), %s433_s3, 0 }
  0x1e   : > { %s437_s4 = scalar_select %p54_p11, %s433_s3, 8 }
  0x1f   : > { %154 = sbr.rel (%p515_p12) target bundleno = 84 (0x54), region = 58  ;;  %s443_s6 = smov (!%p515_p12), 0  }
  0x26 LB: >> { %s518_s29 = sshll.u32 %s348_s21, 3  ;;  %s72_s9 = scalar_lea.vmem %s51_s5, %s352_s6 [#allocation5]  ;;  %s352_s6 = sphi %s443_s6, %s59_s6  }
  0x27   : >> { %s62_s7 = sadd.s32 %s352_s6, %s518_s29  ;;  %s80_s11 = sshll.u32 %s72_s9, 4  ;;  %s81_s11 = int_to_ptr.vmem [resolvable:$true] %s80_s11 }
  0x28   : >> { %s63_s8 = sld [smem:[#allocation4 + %s62_s7]]  ;;  %s184_s10 = sshll.u32 %s62_s7, 2 }
  0x29   : >> { %s260_s23 = scalar_lea.hbm %s512_s1, 1024 }
  0x2e   : >> { %p64_p13 = scmp.gt.s32.totalorder %s63_s8, 0  ;;  %p179_p0 = scmp.lt.s32.totalorder %s63_s8, 3 }
  0x30   : >> { %s524_s8 = smov (!%p64_p13, %s63_s8), 0 }
  0x31   : >> { %s526_s8 = smov (!%p179_p0, %s524_s8), 3 }
  0x32   : >> { %s69_s12 = sadd.s32 %s526_s8, %s184_s10 }
  0x33   : >> { %s185_s13 = sshll.u32 %s69_s12, 4 }
  0x34   : >> { %s71_s16 = scalar_lea.hbm %s512_s1, %s185_s13 }
  0x35   : >> { %s258_s17 = scalar_lea.hbm %s71_s16, 16  ;;  %p261_p2 = scmp.lt.u32.totalorder %s71_s16, %s512_s1 }
  0x36   : >> { %p259_p1 = scmp.ne.s32.totalorder %s71_s16, %s258_s17  ;;  %p262_p3 = scmp.lt.u32.totalorder %s260_s23, %s258_s17 }
  0x37   : >> { %p264_p5 = scmp.lt.u32.totalorder %s258_s17, %s71_s16 }
  0x38   : >> { %p263_p4 = por %p262_p3, %p261_p2 }
  0x3a   : >> { %p265_p6 = por %p264_p5, %p263_p4 }
  0x3c   : >> { %p266_p8 = pnand %p265_p6, %p259_p1 }
  0x3e   : >> { %269 = shalt.err (!%p266_p8)  }
  0x3f   : >> { %s270_s7 = scalar_lea.vmem %s81_s11, 16  ;;  %s359_s8 = smov [#allocation5]  }
  0x40   : >> { %p271_p10 = scmp.ne.s32.totalorder %s81_s11, %s270_s7  ;;  %s272_s9 = sshll.u32 %s359_s8, 4  ;;  %s273_s9 = int_to_ptr.vmem [resolvable:$false] %s272_s9 }
  0x41   : >> { %s274_s10 = scalar_lea.vmem %s273_s9, 256  ;;  %p275_p11 = scmp.lt.s32.totalorder %s81_s11, %s273_s9 }
  0x42   : >> { %p276_p13 = scmp.lt.s32.totalorder %s274_s10, %s270_s7 }
  0x44   : >> { %p277_p0 = por %p276_p13, %p275_p11 }
  0x46   : >> { %p278_p12 = pnand %p277_p0, %p271_p10 }
  0x48   : >> { %281 = shalt.err (!%p278_p12)  }
  0x49   : >> { %83 = dma.hbm_to_vmem [thread:$0]  %s71_s16, 16, %s81_s11, [#allocation2] }
  0x4a   : >> { %s59_s6 = sadd.s32 1, %s352_s6  }
  0x4b   : >> { %p58_p2 = scmp.ge.s32.totalorder %s59_s6, %s437_s4 }
  0x4d   : > { %61 = sbr.rel (!%p58_p2) target bundleno = 38 (0x26), region = 64 }
  0x54 PF: > { %p519_p1 = scmp.le.s32.totalorder %s433_s3, 0 }
  0x55   : > { %s354_s29 = smov (!%p519_p1), 0  }
  0x56   : > { %159 = sbr.rel (%p519_p1) target bundleno = 104 (0x68), region = 69 }
  0x5d LB: >> { %332 = dma.done.wait [#allocation2], 16  ;;  %s356_s29 = sphi %s354_s29, %s87_s29  }
  0x5e   : >> { %333 = vsyncadd [#allocation2], 4294967280  ;;  %s87_s29 = sadd.s32 1, %s356_s29  }
  0x5f   : >> { %p86_p12 = scmp.ge.s32.totalorder %s87_s29, %s437_s4 }
  0x61   : > { %89 = sbr.rel (!%p86_p12) target bundleno = 93 (0x5d), region = 75 }
  0x68 PF: > { %s188_s6 = sshll.u32 %s348_s21, 7  ;;  %s107_s13 = sshll.u32 %s51_s5, 4  ;;  %s108_s13 = int_to_ptr.vmem [resolvable:$true] %s107_s13 }
  0x69   : > { %s474_s12 = scalar_lea.hbm %s513_s2, %s188_s6  ;;  %s94_s14 = scalar_lea.sflag [#allocation6], %s49_s28 }
  0x6a   : > { %s282_s15 = scalar_lea.vmem %s108_s13, 128  ;;  %s360_s4 = smov [#allocation5]  }
  0x6b   : > { %p283_p3 = scmp.ne.s32.totalorder %s108_s13, %s282_s15  ;;  %s286_s16 = sshll.u32 %s360_s4, 4  ;;  %s287_s16 = int_to_ptr.vmem [resolvable:$false] %s286_s16 }
  0x6c   : > { %s288_s17 = scalar_lea.vmem %s287_s16, 256  ;;  %p289_p6 = scmp.lt.s32.totalorder %s108_s13, %s287_s16 }
  0x6d   : > { %p284_p4 = pnand %p283_p3, %p416_p7  ;;  %p290_p8 = scmp.lt.s32.totalorder %s288_s17, %s282_s15 }
  0x6f   : > { %p285_p5 = pneg %p284_p4  ;;  %p291_p10 = por %p290_p8, %p289_p6 }
  0x71   : > { %p292_p11 = pnand %p291_p10, %p285_p5 }
  0x73   : > { %295 = shalt.err (!%p292_p11)
}
  0x74   : > { %s296_s28 = scalar_lea.hbm %s474_s12, 128  ;;  %s300_s18 = scalar_lea.hbm %s513_s2, 256 }
  0x75   : > { %p297_p13 = scmp.ne.s32.totalorder %s474_s12, %s296_s28  ;;  %p301_p1 = scmp.lt.u32.totalorder %s474_s12, %s513_s2 }
  0x76   : > { %p302_p12 = scmp.lt.u32.totalorder %s300_s18, %s296_s28  ;;  %p304_p4 = scmp.lt.u32.totalorder %s296_s28, %s474_s12 }
  0x77   : > { %p298_p0 = pnand %p297_p13, %p416_p7 }
  0x78   : > { %p303_p3 = por %p302_p12, %p301_p1 }
  0x79   : > { %p299_p2 = pneg %p298_p0 }
  0x7a   : > { %p305_p5 = por %p304_p4, %p303_p3 }
  0x7c   : > { %p306_p6 = pnand %p305_p5, %p299_p2 }
  0x7e   : > { %309 = shalt.err (!%p306_p6)
}
  0x7f   : > { %200 = dma.vmem_to_hbm [thread:$0]  (%p416_p7), %s108_s13, 128, %s474_s12, %s94_s14  }
  0x80 PF: > { %p206_p8 = scmp.ge.s32.totalorder %s348_s21, 1  ;;  %s119_s24 = sand.u32 1, %s340_s19  }
  0x81   : > { %s120_s7 = scalar_lea.sflag [#allocation6], %s119_s24 }
  0x82   : > { %p203_p10 = pnand %p206_p8, %p420_p9 }
  0x84   : > { %335 = dma.done.wait (!%p203_p10), %s120_s7, 128  }
  0x85   : > { %337 = vsyncadd (!%p203_p10), %s120_s7, 4294967168  ;;  %p16_p11 = scmp.ge.s32.totalorder %s405_s22, 3   ;;  %s520_s19 = smov %s344_s20 }
  0x86   : > { %s521_s20 = smov %s414_s25  ;;  %s522_s21 = smov %s405_s22 }
  0x87   :  { %18 = sbr.rel (!%p16_p11) target bundleno = 15 (0xf), region = 86 }
  0x8e   :  { %125 = vsyncpa [#allocation6], 1 }
  0x8f   :  { %127 = vsyncpa [#allocation6 + $0x1], 1 }
  0x90   :  { %128 = vsyncmov [#allocation2] }
  0x93   :  { %s129_s21 = vpop.sfrf %128 }
  0x94   :  { %p191_p7 = scmp.ne.s32.totalorder %s129_s21, 0 }
  0x96   :  { %133 = shalt.err (%p191_p7)  }

</bundles_post_ra>
